<compile_context>
chip_gen: v7x
topology: tpu7x:2x2x1
jax: 0.10.0
libtpu: 0.0.40
codegen_flags: <defaults>
</compile_context>

<pallas_src>
import jax
import jax.numpy as jnp
from jax.experimental import pallas as pl
from jax.experimental.pallas import tpu as pltpu


def _round_up(n, m):
    return ((n + m - 1) // m) * m


def ffn_kernel(x_ref, w1_ref, b1_ref, w2_ref, b2_ref, o_ref, acc_ref):
    # x_ref:  (tm, d_model)
    # w1_ref: (th, d_model)   slice of linear1.weight  (out, in)
    # b1_ref: (1, th)         slice of linear1.bias
    # w2_ref: (d_model, th)   slice of linear2.weight  (out, in)
    # b2_ref: (1, d_model)    linear2.bias
    # o_ref:  (tm, d_model)
    # acc_ref: (tm, d_model) f32 accumulator (persists across the hidden axis)
    j = pl.program_id(1)

    @pl.when(j == 0)
    def _init():
        acc_ref[...] = jnp.zeros_like(acc_ref)

    # linear1 for this hidden slice: (tm, d_model) . (th, d_model)^T -> (tm, th)
    h = jax.lax.dot_general(
        x_ref[...], w1_ref[...],
        dimension_numbers=(((1,), (1,)), ((), ())),
        preferred_element_type=jnp.float32)
    h = jnp.maximum(h + b1_ref[...].astype(jnp.float32), 0.0)  # bias + ReLU (f32 on VPU)
    # dropout: eval-mode identity.
    # TODO(synk): training-mode dropout (pltpu.prng_random_bits mask/scale) not wired in.

    # linear2 partial sum: (tm, th) . (d_model, th)^T -> (tm, d_model), accumulate.
    acc_ref[...] += jax.lax.dot_general(
        h.astype(w2_ref.dtype), w2_ref[...],
        dimension_numbers=(((1,), (1,)), ((), ())),
        preferred_element_type=jnp.float32)

    @pl.when(j == pl.num_programs(1) - 1)
    def _finalize():
        o_ref[...] = (acc_ref[...] + b2_ref[...].astype(jnp.float32)).astype(o_ref.dtype)


def feed_forward(x, w1, b1, w2, b2, *, tm=256, th=512):
    """x: (B, S, d_model); w1: (d_hidden, d_model); b1: (d_hidden,);
       w2: (d_model, d_hidden); b2: (d_model,). Returns (B, S, d_model)."""
    B, S, d_model = x.shape
    d_hidden = w1.shape[0]
    assert w1.shape == (d_hidden, d_model)
    assert w2.shape == (d_model, d_hidden)

    M = B * S
    # Sublane packing granularity: 16 rows for bf16, 8 for f32.
    row_g = 16 if x.dtype == jnp.bfloat16 else 8
    tm_eff = min(tm, _round_up(M, row_g))
    M_pad = _round_up(M, tm_eff)

    # Hidden tile must evenly divide d_hidden and keep blocks lane-dense
    # (multiple of 128); otherwise fall back to a single full-width hidden tile.
    if th < d_hidden and d_hidden % th == 0 and th % 128 == 0:
        th_eff = th
    else:
        th_eff = d_hidden

    x2d = x.reshape(M, d_model)
    if M_pad != M:
        x2d = jnp.pad(x2d, ((0, M_pad - M), (0, 0)))

    b1r = b1.reshape(1, d_hidden)
    b2r = b2.reshape(1, d_model)

    # Explicit VMEM budget (double-buffered tiles + f32 accumulator), capped at
    # the v7x 64 MiB physical ceiling.
    itemsize = jnp.dtype(x.dtype).itemsize
    est = 2 * itemsize * (2 * tm_eff * d_model          # x tile + out tile
                          + 2 * th_eff * d_model        # w1 tile + w2 tile
                          + th_eff + d_model)           # bias slices
    est += 4 * tm_eff * d_model                         # f32 accumulator
    vmem_limit = int(min(64 << 20, est + (8 << 20)))

    out2d = pl.pallas_call(
        ffn_kernel,
        out_shape=jax.ShapeDtypeStruct((M_pad, d_model), x.dtype),
        grid_spec=pltpu.PrefetchScalarGridSpec(
            num_scalar_prefetch=0,
            grid=(M_pad // tm_eff, d_hidden // th_eff),
            in_specs=[
                pl.BlockSpec((tm_eff, d_model), lambda i, j: (i, 0)),   # x tokens
                pl.BlockSpec((th_eff, d_model), lambda i, j: (j, 0)),   # w1 slice
                pl.BlockSpec((1, th_eff), lambda i, j: (0, j)),         # b1 slice
                pl.BlockSpec((d_model, th_eff), lambda i, j: (0, j)),   # w2 slice
                pl.BlockSpec((1, d_model), lambda i, j: (0, 0)),        # b2
            ],
            out_specs=pl.BlockSpec((tm_eff, d_model), lambda i, j: (i, 0)),
            scratch_shapes=[pltpu.VMEM((tm_eff, d_model), jnp.float32)],
        ),
        compiler_params=pltpu.CompilerParams(
            dimension_semantics=("parallel", "arbitrary"),
            vmem_limit_bytes=vmem_limit),
    )(x2d, w1, b1r, w2, b2r)

    return out2d[:M].reshape(B, S, d_model)


if __name__ == "__main__":
    # Small but lane-dense shapes (d_model, d_hidden multiples of 128).
    B, S = 2, 8
    d_model, d_hidden = 128, 512
    dropout_p = 0.1  # unused at inference (identity)

    key = jax.random.PRNGKey(0)
    kx, kw1, kb1, kw2, kb2 = jax.random.split(key, 5)

    x = jax.random.normal(kx, (B, S, d_model), dtype=jnp.float32)
    # nn.Linear parameter shapes: weight (out, in), bias (out,)
    w1 = jax.random.normal(kw1, (d_hidden, d_model), dtype=jnp.float32) * 0.1
    b1 = jax.random.normal(kb1, (d_hidden,), dtype=jnp.float32) * 0.1
    w2 = jax.random.normal(kw2, (d_model, d_hidden), dtype=jnp.float32) * 0.1
    b2 = jax.random.normal(kb2, (d_model,), dtype=jnp.float32) * 0.1

    # th=256 so the demo exercises the tiled d_hidden reduction axis (2 steps).
    out = feed_forward(x, w1, b1, w2, b2, tm=256, th=256)
    out = jax.block_until_ready(out)

    # Pure-JAX reference for sanity check.
    ref = jnp.maximum(x @ w1.T + b1, 0.0) @ w2.T + b2
    assert out.shape == (B, S, d_model)
    assert jnp.allclose(out, ref, atol=2e-2, rtol=2e-2), (
        float(jnp.max(jnp.abs(out - ref))))

    print("KERNEL_OK")
</pallas_src>

<mosaic_0001>
module attributes {stable_mosaic.version = 11 : i64} {
  func.func @ffn_kernel(%arg0: i32, %arg1: i32, %arg2: memref<16x128xf32, #tpu.memory_space<vmem>>, %arg3: memref<256x128xf32, #tpu.memory_space<vmem>>, %arg4: memref<1x256xf32, #tpu.memory_space<vmem>>, %arg5: memref<128x256xf32, #tpu.memory_space<vmem>>, %arg6: memref<1x128xf32, #tpu.memory_space<vmem>>, %arg7: memref<16x128xf32, #tpu.memory_space<vmem>>, %arg8: memref<16x128xf32, #tpu.memory_space<vmem>>) attributes {dimension_semantics = [#tpu.dimension_semantics<parallel>, #tpu.dimension_semantics<arbitrary>], iteration_bounds = array<i64: 1, 2>, scalar_prefetch = 0 : i64, scratch_operands = 1 : i64, tpu.core_type = #tpu.core_type<tc>, window_params = [{transform_indices = @transform_0, window_bounds = array<i64: 16, 128>}, {transform_indices = @transform_1, window_bounds = array<i64: 256, 128>}, {transform_indices = @transform_2, window_bounds = array<i64: 1, 256>}, {transform_indices = @transform_3, window_bounds = array<i64: 128, 256>}, {pipeline_mode = #tpu.pipeline_mode<synchronous>, transform_indices = @transform_4, window_bounds = array<i64: 1, 128>}, {transform_indices = @transform_5, window_bounds = array<i64: 16, 128>}]} {
    %c0_i32 = arith.constant 0 : i32
    %0 = arith.cmpi eq, %arg1, %c0_i32 : i32
    %1 = arith.extui %0 : i1 to i32
    %c0_i32_0 = arith.constant 0 : i32
    %2 = arith.cmpi ne, %1, %c0_i32_0 : i32
    scf.if %2 {
      %cst_15 = arith.constant 0.000000e+00 : f32
      %19 = vector.broadcast %cst_15 : f32 to vector<16x128xf32>
      %c0_16 = arith.constant 0 : index
      %c0_17 = arith.constant 0 : index
      %20 = vector.load %arg8[%c0_16, %c0_17] : memref<16x128xf32, #tpu.memory_space<vmem>>, vector<16x128xf32>
      tpu.vector_store %arg8[%c0_16, %c0_17], %19 {strides = array<i32>} : memref<16x128xf32, #tpu.memory_space<vmem>>, vector<16x128xf32>,
    } else {
    }
    %c0 = arith.constant 0 : index
    %c0_1 = arith.constant 0 : index
    %3 = vector.load %arg2[%c0, %c0_1] : memref<16x128xf32, #tpu.memory_space<vmem>>, vector<16x128xf32>
    %c0_2 = arith.constant 0 : index
    %c0_3 = arith.constant 0 : index
    %4 = vector.load %arg3[%c0_2, %c0_3] : memref<256x128xf32, #tpu.memory_space<vmem>>, vector<256x128xf32>
    %cst = arith.constant dense<0.000000e+00> : vector<16x256xf32>
    %5 = tpu.matmul %3, %4, %cst {dimension_numbers = #tpu.dot_dimension_numbers<[1], [1], [0], [0], [0, 0, 1, 0], [], []>} : vector<16x128xf32>, vector<256x128xf32>, vector<16x256xf32> -> vector<16x256xf32>
    %c0_4 = arith.constant 0 : index
    %c0_5 = arith.constant 0 : index
    %6 = vector.load %arg4[%c0_4, %c0_5] : memref<1x256xf32, #tpu.memory_space<vmem>>, vector<1x256xf32>
    %7 = vector.broadcast %6 : vector<1x256xf32> to vector<16x256xf32>
    %8 = arith.addf %5, %7 : vector<16x256xf32>
    %cst_6 = arith.constant 0.000000e+00 : f32
    %9 = vector.broadcast %cst_6 : f32 to vector<16x256xf32>
    %10 = arith.maximumf %8, %9 : vector<16x256xf32>
    %c0_7 = arith.constant 0 : index
    %c0_8 = arith.constant 0 : index
    %11 = vector.load %arg8[%c0_7, %c0_8] : memref<16x128xf32, #tpu.memory_space<vmem>>, vector<16x128xf32>
    %c0_9 = arith.constant 0 : index
    %c0_10 = arith.constant 0 : index
    %12 = vector.load %arg5[%c0_9, %c0_10] : memref<128x256xf32, #tpu.memory_space<vmem>>, vector<128x256xf32>
    %cst_11 = arith.constant dense<0.000000e+00> : vector<16x128xf32>
    %13 = tpu.matmul %10, %12, %cst_11 {dimension_numbers = #tpu.dot_dimension_numbers<[1], [1], [0], [0], [0, 0, 1, 0], [], []>} : vector<16x256xf32>, vector<128x256xf32>, vector<16x128xf32> -> vector<16x128xf32>
    %14 = arith.addf %11, %13 : vector<16x128xf32>
    %c0_12 = arith.constant 0 : index
    %c0_13 = arith.constant 0 : index
    %15 = vector.load %arg8[%c0_12, %c0_13] : memref<16x128xf32, #tpu.memory_space<vmem>>, vector<16x128xf32>
    tpu.vector_store %arg8[%c0_12, %c0_13], %14 {strides = array<i32>} : memref<16x128xf32, #tpu.memory_space<vmem>>, vector<16x128xf32>,
    %c1_i32 = arith.constant 1 : i32
    %16 = arith.cmpi eq, %arg1, %c1_i32 : i32
    %17 = arith.extui %16 : i1 to i32
    %c0_i32_14 = arith.constant 0 : i32
    %18 = arith.cmpi ne, %17, %c0_i32_14 : i32
    scf.if %18 {
      %c0_15 = arith.constant 0 : index
      %c0_16 = arith.constant 0 : index
      %19 = vector.load %arg8[%c0_15, %c0_16] : memref<16x128xf32, #tpu.memory_space<vmem>>, vector<16x128xf32>
      %c0_17 = arith.constant 0 : index
      %c0_18 = arith.constant 0 : index
      %20 = vector.load %arg6[%c0_17, %c0_18] : memref<1x128xf32, #tpu.memory_space<vmem>>, vector<1x128xf32>
      %21 = vector.broadcast %20 : vector<1x128xf32> to vector<16x128xf32>
      %22 = arith.addf %19, %21 : vector<16x128xf32>
      %c0_19 = arith.constant 0 : index
      %c0_20 = arith.constant 0 : index
      %23 = vector.load %arg7[%c0_19, %c0_20] : memref<16x128xf32, #tpu.memory_space<vmem>>, vector<16x128xf32>
      tpu.vector_store %arg7[%c0_19, %c0_20], %22 {strides = array<i32>} : memref<16x128xf32, #tpu.memory_space<vmem>>, vector<16x128xf32>,
    } else {
    }
    return
  }
  func.func @transform_0(%arg0: i32, %arg1: i32) -> (i32, i32) {
    %c0_i32 = arith.constant 0 : i32
    %c0_i32_0 = arith.constant 0 : i32
    return %arg0, %c0_i32 : i32, i32
  }
  func.func @transform_1(%arg0: i32, %arg1: i32) -> (i32, i32) {
    %c0_i32 = arith.constant 0 : i32
    %c0_i32_0 = arith.constant 0 : i32
    return %arg1, %c0_i32 : i32, i32
  }
  func.func @transform_2(%arg0: i32, %arg1: i32) -> (i32, i32) {
    %c0_i32 = arith.constant 0 : i32
    %c0_i32_0 = arith.constant 0 : i32
    return %c0_i32, %arg1 : i32, i32
  }
  func.func @transform_3(%arg0: i32, %arg1: i32) -> (i32, i32) {
    %c0_i32 = arith.constant 0 : i32
    %c0_i32_0 = arith.constant 0 : i32
    return %c0_i32, %arg1 : i32, i32
  }
  func.func @transform_4(%arg0: i32, %arg1: i32) -> (i32, i32) {
    %c0_i32 = arith.constant 0 : i32
    %c0_i32_0 = arith.constant 0 : i32
    %c0_i32_1 = arith.constant 0 : i32
    return %c0_i32, %c0_i32_0 : i32, i32
  }
  func.func @transform_5(%arg0: i32, %arg1: i32) -> (i32, i32) {
    %c0_i32 = arith.constant 0 : i32
    %c0_i32_0 = arith.constant 0 : i32
    return %arg0, %c0_i32 : i32, i32
  }
}

</mosaic_0001>

<bundles_post_ra>
// kernel: tpu_custom_call.1
= control target key start
LH: loop header
LB: loop body
LE: loop exit
PB: predicated region body
PF: predicated region fallthrough
CT: control target
= control target key end

     0   :  { %s1459_s0 = inlined_call_operand.hbm [shape: f32[16,128], index: 0, kind: input, shape index: {}]   ;;  %s1460_s1 = inlined_call_operand.hbm [shape: f32[512,128], index: 1, kind: input, shape index: {}]   ;;  %s1461_s2 = inlined_call_operand.vmem [shape: f32[1,512], index: 2, kind: input, shape index: {}]   ;;  %s1462_s3 = inlined_call_operand.hbm [shape: f32[128,512], index: 3, kind: input, shape index: {}]   ;;  %s1463_s4 = inlined_call_operand.vmem [shape: f32[1,128], index: 4, kind: input, shape index: {}]   ;;  %s1464_s5 = inlined_call_operand.hbm [shape: f32[16,128], index: 5, kind: output, shape index: {}]  }
   0x1   :  { %1470 = sst [smem:[#allocation13_spill]] %s1460_s1 }
   0x2   :  { %10 = vsyncpa [#allocation4], 0 }
   0x3   :  { %11 = vsyncpa [#allocation7], 0 }
   0x4   :  { %13 = vsyncpa [#allocation7 + $0x1], 0 }
   0x5   :  { %14 = vsyncpa [#allocation5], 0  ;;  %s1136_s18 = smov 0   ;;  %s1138_s19 = smov 0  }
   0x6   :  { %s1140_s20 = smov 0   ;;  %s1142_s21 = smov 0  }
   0x7   :  { %s1144_s22 = smov 0   ;;  %s1146_s23 = smov 0  }
   0x8 LB: > { %s29_s24 = sadd.s32 1, %s1088_s22  ;;  %s65_s25 = sadd.s32 1, %s1080_s20  ;;  %s1092_s23 = sphi %s1146_s23, %s20_s23   ;;  %s1088_s22 = sphi %s1144_s22, %s1487_s22   ;;  %s1084_s21 = sphi %s1142_s21, %s1486_s21   ;;  %s1080_s20 = sphi %s1140_s20, %s1485_s20   ;;  %s1076_s19 = sphi %s1138_s19, %s1484_s19   ;;  %s1072_s18 = sphi %s1136_s18, %s1483_s18  }
   0x9   : > { %p30_p0 = scmp.ge.s32.totalorder %s29_s24, 2  ;;  %p72_p1 = scmp.ne.s32.totalorder %s1080_s20, %s1076_s19 }
   0xa   : > { %p73_p2 = scmp.eq.s32.totalorder %s1092_s23, 0  ;;  %p858_p5 = scmp.lt.s32.totalorder %s1092_s23, 2 }
   0xb   : > { %s1489_s24 = smov (%p30_p0, %s29_s24), 0  ;;  %s220_s28 = sand.u32 1, %s1092_s23  }
   0xc   : > { %p1173_p3 = por %p73_p2, %p72_p1  ;;  %s62_s27 = ssub.s32 %s1088_s22, %s1489_s24 }
   0xd   : > { %p63_p4 = scmp.eq.s32.totalorder %s62_s27, 0  ;;  %s222_s29 = sand.u32 1, %s1080_s20  }
   0xe   : > { %s714_s6 = sshll.u32 %s222_s29, 8  ;;  %s732_s7 = sshll.u32 %s1088_s22, 12 }
   0xf   : > { %s1183_s30 = scalar_select %p63_p4, %s1080_s20, %s65_s25  }
  0x10   : > { %s1472_s1 = sld [smem:[#allocation13_spill]]  ;;  %s224_s11 = scalar_lea.vmem [#allocation6], %s714_s6 }
  0x11   : > { %s231_s12 = sshll.u32 %s224_s11, 4  ;;  %p1195_p6 = pnand %p858_p5, %p1173_p3  ;;  %s1191_s12 = int_to_ptr.vmem [resolvable:$true] %s231_s12 }
  0x12   : > { %s253_s14 = scalar_lea.vmem [#allocation8], %s714_s6  ;;  %s1201_s16 = scalar_lea.sflag [#allocation7], %s220_s28 }
  0x13   : > { %s1199_s15 = sshll.u32 %s253_s14, 4  ;;  %p922_p8 = pneg %p1195_p6  ;;  %s1233_s15 = int_to_ptr.vmem [resolvable:$true] %s1199_s15 }
  0x16   : > { %s1189_s10 = scalar_lea.hbm %s1472_s1, %s732_s7  ;;  %s925_s27 = scalar_lea.hbm %s1472_s1, 8192 }
  0x17   : > { %s920_s17 = scalar_lea.hbm %s1189_s10, 4096  ;;  %p926_p11 = scmp.lt.u32.totalorder %s1189_s10, %s1472_s1 }
  0x18   : > { %p921_p7 = scmp.ne.s32.totalorder %s1189_s10, %s920_s17  ;;  %p927_p12 = scmp.lt.u32.totalorder %s925_s27, %s920_s17 }
  0x19   : > { %p929_p0 = scmp.lt.u32.totalorder %s920_s17, %s1189_s10 }
  0x1a   : > { %p923_p9 = pnand %p922_p8, %p921_p7  ;;  %p928_p13 = por %p927_p12, %p926_p11 }
  0x1c   : > { %p924_p10 = pneg %p923_p9  ;;  %p930_p1 = por %p929_p0, %p928_p13 }
  0x1e   : > { %p931_p2 = pnand %p930_p1, %p924_p10 }
  0x20   : > { %934 = shalt.err (!%p931_p2)
}
  0x21   : > { %s935_s28 = scalar_lea.vmem %s1191_s12, 4096  ;;  %s1094_s6 = smov [#allocation6]  }
  0x22   : > { %p936_p3 = scmp.ne.s32.totalorder %s1191_s12, %s935_s28  ;;  %s940_s8 = sshll.u32 %s1094_s6, 4  ;;  %s941_s8 = int_to_ptr.vmem [resolvable:$false] %s940_s8 }
  0x23   : > { %s942_s9 = scalar_lea.vmem %s941_s8, 8192  ;;  %p943_p7 = scmp.lt.s32.totalorder %s1191_s12, %s941_s8 }
  0x24   : > { %p938_p4 = pnand %p936_p3, %p922_p8  ;;  %p944_p9 = scmp.lt.s32.totalorder %s942_s9, %s935_s28 }
  0x26   : > { %p939_p5 = pneg %p938_p4  ;;  %p945_p11 = por %p944_p9, %p943_p7 }
  0x28   : > { %p946_p12 = pnand %p945_p11, %p939_p5 }
  0x2a   : > { %949 = shalt.err (!%p946_p12)
}
  0x2b   : > { %s1468_s11 = smov 128   ;;  %s1469_s14 = smov 8  }
  0x2c   : > { %853 = dma.hbm_to_vmem [thread:$0]  (!%p1195_p6), %s1189_s10, 4096, %s1191_s12, %s1201_s16, %s1468_s11, %s1468_s11, %s1469_s14  }
  0x2d   : > { %s1236_s17 = sadd.s32 4294967295, %s1092_s23   ;;  %p78_p10 = scmp.ne.s32.totalorder %s1076_s19, %s1072_s18 }
  0x2e   : > { %p1465_p13 = scmp.eq.s32.totalorder %s1236_s17, 0  ;;  %p711_p0 = scmp.ge.s32.totalorder %s1092_s23, 1 }
  0x2f   : > { %p188_p1 = scmp.lt.s32.totalorder %s1092_s23, 3  ;;  %s1097_s10 = smov [#allocation3]  }
  0x30   : > { %p1245_p2 = por %p1465_p13, %p78_p10  ;;  %s203_s12 = sshll.u32 %s1097_s10, 4  ;;  %s1253_s12 = int_to_ptr.vmem [resolvable:$true] %s203_s12 }
  0x31   : > { %p1249_p3 = pnand %p711_p0, %p188_p1  ;;  %s733_s27 = sshll.u32 %s1088_s22, 8 }
  0x32   : > { %s1474_s25 = scalar_select %p1245_p2, 1, 0 }
  0x33   : > { %s1475_s26 = scalar_select %p1249_p3, 1, 0 }
  0x34   : > { %p846_p4 = pneg %p1249_p3  ;;  %s1261_s7 = scalar_lea.hbm %s1462_s3, %s733_s27 }
  0x35   : > { %s950_s6 = scalar_lea.hbm %s1261_s7, 4096  ;;  %s955_s10 = scalar_lea.hbm %s1462_s3, 8192 }
  0x36   : > { %p1265_p5 = pnand %p846_p4, %p1465_p13  ;;  %p951_p7 = scmp.ne.s32.totalorder %s1261_s7, %s950_s6 }
  0x37   : > { %p956_p12 = scmp.lt.u32.totalorder %s1261_s7, %s1462_s3  ;;  %p957_p10 = scmp.lt.u32.totalorder %s955_s10, %s950_s6 }
  0x38   : > { %p953_p9 = pnand %p951_p7, %p922_p8  ;;  %p959_p1 = scmp.lt.u32.totalorder %s950_s6, %s1261_s7 }
  0x39   : > { %p958_p0 = por %p957_p10, %p956_p12 }
  0x3a   : > { %p954_p11 = pneg %p953_p9 }
  0x3b   : > { %p960_p4 = por %p959_p1, %p958_p0 }
  0x3d   : > { %p961_p13 = pnand %p960_p4, %p954_p11 }
  0x3f   : > { %964 = shalt.err (!%p961_p13)
}
  0x40   : > { %s965_s29 = scalar_lea.vmem %s1233_s15, 4096  ;;  %s1098_s8 = smov [#allocation8]  }
  0x41   : > { %p966_p7 = scmp.ne.s32.totalorder %s1233_s15, %s965_s29  ;;  %s970_s9 = sshll.u32 %s1098_s8, 4  ;;  %s971_s9 = int_to_ptr.vmem [resolvable:$false] %s970_s9 }
  0x42   : > { %s972_s27 = scalar_lea.vmem %s971_s9, 8192  ;;  %p973_p3 = scmp.lt.s32.totalorder %s1233_s15, %s971_s9 }
  0x43   : > { %p968_p9 = pnand %p966_p7, %p922_p8  ;;  %p974_p12 = scmp.lt.s32.totalorder %s972_s27, %s965_s29 }
  0x45   : > { %p969_p2 = pneg %p968_p9  ;;  %p975_p10 = por %p974_p12, %p973_p3 }
  0x47   : > { %p976_p0 = pnand %p975_p10, %p969_p2 }
  0x49   : > { %979 = shalt.err (!%p976_p0)
}
  0x4a   : > { %s1099_s6 = smov 512   ;;  %s1100_s10 = smov 256  }
  0x4b   : > { %s1101_s18 = smov 16   ;;  %s980_s8 = scalar_lea.hbm %s1459_s0, 256 }
  0x4c   : > { %856 = dma.hbm_to_vmem [thread:$0]  (!%p1195_p6), %s1261_s7, 4096, %s1233_s15, %s1201_s16, %s1099_s6, %s1100_s10, %s1101_s18  }
  0x4d   : > { %p981_p8 = scmp.ne.s32.totalorder %s1459_s0, %s980_s8  ;;  %p982_p13 = pneg %p1265_p5 }
  0x4e   : > { %p987_p11 = scmp.lt.u32.totalorder %s980_s8, %s1459_s0 }
  0x4f   : > { %p983_p2 = pnand %p982_p13, %p981_p8 }
  0x51   : > { %p984_p3 = pneg %p983_p2 }
  0x53   : > { %p989_p1 = pnand %p987_p11, %p984_p3 }
  0x55   : > { %992 = shalt.err (!%p989_p1)
}
  0x56   : > { %s993_s13 = scalar_lea.vmem %s1253_s12, 256  ;;  %p1001_p9 = scmp.lt.s32.totalorder %s1253_s12, %s1253_s12 }
  0x57   : > { %p994_p6 = scmp.ne.s32.totalorder %s1253_s12, %s993_s13  ;;  %p1002_p12 = scmp.lt.s32.totalorder %s993_s13, %s993_s13 }
  0x59   : > { %p996_p4 = pnand %p994_p6, %p982_p13  ;;  %p1003_p10 = por %p1002_p12, %p1001_p9 }
  0x5b   : > { %p997_p7 = pneg %p996_p4 }
  0x5d   : > { %p1004_p0 = pnand %p1003_p10, %p997_p7 }
  0x5f   : > { %1007 = shalt.err (!%p1004_p0)
}
  0x60   : > { %s1477_s1 = smov 8   ;;  %s1478_s15 = smov 128  }
  0x61   : > { %849 = dma.hbm_to_vmem [thread:$0]  (!%p1265_p5), %s1459_s0, 256, %s1253_s12, [#allocation4], %s1478_s15, %s1478_s15, %s1477_s1  }
  0x62   : > { %p1479_p8 = scmp.ne.s32.totalorder %s1475_s26, 0 }
  0x63   : > { %p1480_p13 = scmp.eq.s32.totalorder (!%p1479_p8), %s1236_s17, 0 }
  0x64   : > { %272 = sbr.rel (%p1479_p8) target bundleno = 663 (0x297), region = 40 }
  0x6b   : > { %1059 = dma.done.wait (%p1480_p13), [#allocation4], 256   ;;  %p1481_p2 = pmov %p1480_p13 }
  0x6c   : > { %s278_s14 = sand.u32 1, %s1236_s17   ;;  %s280_s7 = sand.u32 1, %s1076_s19  }
  0x6d   : > { %1061 = vsyncadd (%p1481_p2), [#allocation4], 4294967040  ;;  %s722_s28 = sshll.u32 %s280_s7, 8  ;;  %s279_s6 = scalar_lea.sflag [#allocation7], %s278_s14 }
  0x6e   : > { %s1325_s10 = scalar_lea.vmem [#allocation6], %s722_s28  ;;  %p1482_p3 = scmp.ne.s32.totalorder %s1474_s25, 0 }
  0x70   : > { %1063 = dma.done.wait (%p1482_p3), %s279_s6, 8192  }
  0x71   : > { %1065 = vsyncadd (%p1482_p3), %s279_s6, 4294959104  ;;  %s724_s26 = sshll.u32 %s1084_s21, 1  ;;  %s1338_s9 = scalar_lea.vmem [#allocation8], %s722_s28 }
  0x72   : > { %p325_p5 = scmp.lt.s32.totalorder %s724_s26, 3  ;;  %p725_p11 = scmp.ne.s32.totalorder %s1084_s21, 0 }
  0x73   : > { %v1102_v0 = vmov (!%p725_p11), 0.0  }
  0x74   : > { %s1491_s26 = smov (!%p325_p5, %s724_s26), 3  ;;  %334 = sbr.rel (%p725_p11) target bundleno = 123 (0x7b), region = 56 }
  0x75   : > { %s327_s8 = scalar_lea.vmem %s1461_s2, %s1491_s26  ;;  %335 = vst [vmem:[#allocation2] sm:$0xff] (!%p725_p11), %v1102_v0  ;;  %336 = vst [vmem:[#allocation2 + $0x8] sm:$0xff] (!%p725_p11), %v1102_v0 }
  0x7b PF: > { %v355_v1 = vld [vmem:[%s1325_s10 + $0x80] sm:$0xff]  ;;  %v356_v2 = vld [vmem:[%s1325_s10 + $0x88] sm:$0xff]  ;;  %v357_v6 = vld [vmem:[%s1325_s10 + $0x90] sm:$0xff]  ;;  %p726_p1 = scmp.ne.s32.totalorder %s1084_s21, 1 }
  0x7c   : > { %v339_v3 = vld [vmem:[%s1325_s10] sm:$0xff]  ;;  %v770_v4 = vpack.c.bf16 %v356_v2, %v355_v1  ;;  %v340_v5 = vld [vmem:[%s1325_s10 + $0x8] sm:$0xff]  ;;  %v358_v7 = vld [vmem:[%s1325_s10 + $0x98] sm:$0xff] }
  0x7d   : > { %v772_v8 = vpack.c.bf16 %v340_v5, %v339_v3  ;;  %v774_v9 = vpack.c.bf16 %v358_v7, %v357_v6  ;;  %v341_v10 = vld [vmem:[%s1325_s10 + $0x10] sm:$0xff]  ;;  %v342_v11 = vld [vmem:[%s1325_s10 + $0x18] sm:$0xff]  ;;  %v359_v12 = vld [vmem:[%s1325_s10 + $0xa0] sm:$0xff] }
  0x7e   : > { %771 = vmatprep.subr.bf16.mxu0 %v770_v4  ;;  %v360_v13 = vld [vmem:[%s1325_s10 + $0xa8] sm:$0xff]  ;;  %v776_v14 = vpack.c.bf16 %v342_v11, %v341_v10  ;;  %v1351_v16 = vld [vmem:[#allocation3] sm:$0xff]  ;;  %v469_v18 = vld [vmem:[%s1338_s9 + $0x18] sm:$0xff] }
  0x7f   : > { %773 = vmatpush3.bf16.xpose.msra.mxu0 %v772_v8  ;;  %v778_v15 = vpack.c.bf16 %v360_v13, %v359_v12  ;;  %766 = vmatprep.mubr.f32.mxu0 %v1351_v16  ;;  %v467_v17 = vld [vmem:[%s1338_s9 + $0x8] sm:$0xff]  ;;  %v466_v20 = vld [vmem:[%s1338_s9] sm:$0xff]  ;;  %v468_v21 = vld [vmem:[%s1338_s9 + $0x10] sm:$0xff] }
  0x80   : > { %775 = vmatprep.subr.bf16.mxu0 %v774_v9  ;;  %v802_v19 = vpack.c.bf16 %v469_v18, %v467_v17  ;;  %v471_v22 = vld [vmem:[%s1338_s9 + $0x28] sm:$0xff]  ;;  %v343_v23 = vld [vmem:[%s1325_s10 + $0x20] sm:$0xff]  ;;  %v804_v25 = vpack.c.bf16 %v468_v21, %v466_v20  ;;  %v473_v26 = vld [vmem:[%s1338_s9 + $0x38] sm:$0xff] }
  0x81   : > { %v344_v24 = vld [vmem:[%s1325_s10 + $0x28] sm:$0xff]  ;;  %v361_v27 = vld [vmem:[%s1325_s10 + $0xb0] sm:$0xff]  ;;  %v362_v28 = vld [vmem:[%s1325_s10 + $0xb8] sm:$0xff]  ;;  %v806_v29 = vpack.c.bf16 %v473_v26, %v471_v22 }
  0x82   : > { %803 = vmatprep.subr.bf16.mxu1 %v802_v19  ;;  %v780_v30 = vpack.c.bf16 %v344_v24, %v343_v23  ;;  %v470_v31 = vld [vmem:[%s1338_s9 + $0x20] sm:$0xff]  ;;  %v472_v32 = vld [vmem:[%s1338_s9 + $0x30] sm:$0xff]  ;;  %v782_v33 = vpack.c.bf16 %v362_v28, %v361_v27  ;;  %v475_v34 = vld [vmem:[%s1338_s9 + $0x48] sm:$0xff] }
  0x83   : > { %805 = vmatpush1.bf16.xpose.msra.mxu1 %v804_v25  ;;  %v477_v35 = vld [vmem:[%s1338_s9 + $0x58] sm:$0xff]  ;;  %v808_v36 = vpack.c.bf16 %v472_v32, %v470_v31  ;;  %v345_v38 = vld [vmem:[%s1325_s10 + $0x30] sm:$0xff]  ;;  %v363_v40 = vld [vmem:[%s1325_s10 + $0xc0] sm:$0xff] }
  0x84   : > { %807 = vmatprep.subr.bf16.mxu1 %v806_v29  ;;  %v810_v37 = vpack.c.bf16 %v477_v35, %v475_v34  ;;  %v346_v39 = vld [vmem:[%s1325_s10 + $0x38] sm:$0xff]  ;;  %v364_v41 = vld [vmem:[%s1325_s10 + $0xc8] sm:$0xff]  ;;  %v474_v43 = vld [vmem:[%s1338_s9 + $0x40] sm:$0xff] }
  0x85   : > { %v784_v42 = vpack.c.bf16 %v346_v39, %v345_v38  ;;  %v476_v44 = vld [vmem:[%s1338_s9 + $0x50] sm:$0xff]  ;;  %v786_v45 = vpack.c.bf16 %v364_v41, %v363_v40  ;;  %v479_v46 = vld [vmem:[%s1338_s9 + $0x68] sm:$0xff]  ;;  %v481_v47 = vld [vmem:[%s1338_s9 + $0x78] sm:$0xff] }
  0x86   : > { %v812_v48 = vpack.c.bf16 %v476_v44, %v474_v43  ;;  %v814_v49 = vpack.c.bf16 %v481_v47, %v479_v46  ;;  %v347_v50 = vld [vmem:[%s1325_s10 + $0x40] sm:$0xff]  ;;  %v348_v51 = vld [vmem:[%s1325_s10 + $0x48] sm:$0xff]  ;;  %v365_v52 = vld [vmem:[%s1325_s10 + $0xd0] sm:$0xff] }
  0x87   : > { %777 = vmatpush3.bf16.xpose.msra.mxu0 %v776_v14  ;;  %v366_v53 = vld [vmem:[%s1325_s10 + $0xd8] sm:$0xff]  ;;  %v788_v54 = vpack.c.bf16 %v348_v51, %v347_v50  ;;  %v478_v55 = vld [vmem:[%s1338_s9 + $0x60] sm:$0xff]  ;;  %v480_v56 = vld [vmem:[%s1338_s9 + $0x70] sm:$0xff] }
  0x88   : > { %779 = vmatprep.subr.bf16.mxu0 %v778_v15  ;;  %v790_v57 = vpack.c.bf16 %v366_v53, %v365_v52  ;;  %v483_v58 = vld [vmem:[%s1338_s9 + $0x88] sm:$0xff]  ;;  %v485_v59 = vld [vmem:[%s1338_s9 + $0x98] sm:$0xff]  ;;  %v816_v60 = vpack.c.bf16 %v480_v56, %v478_v55  ;;  %v349_v62 = vld [vmem:[%s1325_s10 + $0x50] sm:$0xff] }
  0x89   : > { %v818_v61 = vpack.c.bf16 %v485_v59, %v483_v58  ;;  %v350_v63 = vld [vmem:[%s1325_s10 + $0x58] sm:$0xff]  ;;  %v367_v0 = vld [vmem:[%s1325_s10 + $0xe0] sm:$0xff]  ;;  %v368_v1 = vld [vmem:[%s1325_s10 + $0xe8] sm:$0xff] }
  0x8a   : > { %v792_v2 = vpack.c.bf16 %v350_v63, %v349_v62  ;;  %v482_v3 = vld [vmem:[%s1338_s9 + $0x80] sm:$0xff]  ;;  %v484_v4 = vld [vmem:[%s1338_s9 + $0x90] sm:$0xff]  ;;  %v794_v5 = vpack.c.bf16 %v368_v1, %v367_v0  ;;  %v487_v6 = vld [vmem:[%s1338_s9 + $0xa8] sm:$0xff] }
  0x8b   : > { %809 = vmatpush1.bf16.xpose.msra.mxu1 %v808_v36  ;;  %v489_v7 = vld [vmem:[%s1338_s9 + $0xb8] sm:$0xff]  ;;  %v820_v8 = vpack.c.bf16 %v484_v4, %v482_v3  ;;  %v351_v10 = vld [vmem:[%s1325_s10 + $0x60] sm:$0xff]  ;;  %v352_v11 = vld [vmem:[%s1325_s10 + $0x68] sm:$0xff]  ;;  %v373_v36 = vlaneseq }
  0x8c   : > { %811 = vmatprep.subr.bf16.mxu1 %v810_v37  ;;  %v822_v9 = vpack.c.bf16 %v489_v7, %v487_v6  ;;  %v369_v12 = vld [vmem:[%s1325_s10 + $0xf0] sm:$0xff]  ;;  %v370_v13 = vld [vmem:[%s1325_s10 + $0xf8] sm:$0xff]  ;;  %v796_v14 = vpack.c.bf16 %v352_v11, %v351_v10  ;;  %v486_v15 = vld [vmem:[%s1338_s9 + $0xa0] sm:$0xff] }
  0x8d   : > { %v488_v17 = vld [vmem:[%s1338_s9 + $0xb0] sm:$0xff]  ;;  %v798_v18 = vpack.c.bf16 %v370_v13, %v369_v12  ;;  %v491_v19 = vld [vmem:[%s1338_s9 + $0xc8] sm:$0xff]  ;;  %v493_v20 = vld [vmem:[%s1338_s9 + $0xd8] sm:$0xff]  ;;  %v374_v37 = vshrl.u32 %v373_v36, 7 }
  0x8e   : > { %v824_v21 = vpack.c.bf16 %v488_v17, %v486_v15  ;;  %v826_v22 = vpack.c.bf16 %v493_v20, %v491_v19  ;;  %v353_v23 = vld [vmem:[%s1325_s10 + $0x70] sm:$0xff]  ;;  %v354_v24 = vld [vmem:[%s1325_s10 + $0x78] sm:$0xff]  ;;  %v490_v26 = vld [vmem:[%s1338_s9 + $0xc0] sm:$0xff] }
  0x8f   : > { %781 = vmatpush3.bf16.xpose.msra.mxu0 %v780_v30  ;;  %v800_v25 = vpack.c.bf16 %v354_v24, %v353_v23  ;;  %v492_v27 = vld [vmem:[%s1338_s9 + $0xd0] sm:$0xff]  ;;  %v495_v28 = vld [vmem:[%s1338_s9 + $0xe8] sm:$0xff]  ;;  %v497_v29 = vld [vmem:[%s1338_s9 + $0xf8] sm:$0xff]  ;;  %v375_v38 = vsub.s32 0, %v374_v37  ;;  %v379_v40 = vsub.s32 1, %v374_v37 }
  0x90   : > { %783 = vmatprep.subr.bf16.mxu0 %v782_v33  ;;  %v828_v30 = vpack.c.bf16 %v492_v27, %v490_v26  ;;  %v830_v31 = vpack.c.bf16 %v497_v29, %v495_v28  ;;  %v338_v32 = vld [vmem:[#allocation3 + $0x8] sm:$0xff]  ;;  %v494_v33 = vld [vmem:[%s1338_s9 + $0xe0] sm:$0xff]  ;;  %v496_v34 = vld [vmem:[%s1338_s9 + $0xf0] sm:$0xff] }
  0x91   : > { %v832_v35 = vpack.c.bf16 %v496_v34, %v494_v33  ;;  %v371_v39 = vld [vmem:[%s327_s8] sm:$0x3]  ;;  %v465_v58 = vld [vmem:[#allocation2 + $0x8] sm:$0xff] }
  0x92   : > { %v376_v41 = vrot.slane %v371_v39, %v375_v38  ;;  %v727_v63 = vld [vmem:[%s1463_s4] ss:$0 sm:$0xff] (!%p726_p1) }
  0x93   : > { %813 = vmatpush1.bf16.xpose.msra.mxu1 %v812_v48 }
  0x94   : > { %815 = vmatprep.subr.bf16.mxu1 %v814_v49 }
  0x97   : > { %785 = vmatpush3.bf16.xpose.msra.mxu0 %v784_v42  ;;  %v380_v42 = vrot.slane %v371_v39, %v379_v40 }
  0x98   : > { %787 = vmatprep.subr.bf16.mxu0 %v786_v45 }
  0x9b   : > { %817 = vmatpush1.bf16.xpose.msra.mxu1 %v816_v60 }
  0x9c   : > { %819 = vmatprep.subr.bf16.mxu1 %v818_v61 }
  0x9f   : > { %789 = vmatpush3.bf16.xpose.msra.mxu0 %v788_v54  ;;  %v464_v54 = vld [vmem:[#allocation2] sm:$0xff] }
  0xa0   : > { %791 = vmatprep.subr.bf16.mxu0 %v790_v57 }
  0xa3   : > { %821 = vmatpush1.bf16.xpose.msra.mxu1 %v820_v8 }
  0xa4   : > { %823 = vmatprep.subr.bf16.mxu1 %v822_v9 }
  0xa7   : > { %793 = vmatpush3.bf16.xpose.msra.mxu0 %v792_v2 }
  0xa8   : > { %795 = vmatprep.subr.bf16.mxu0 %v794_v5 }
  0xab   : > { %825 = vmatpush1.bf16.xpose.msra.mxu1 %v824_v21 }
  0xac   : > { %827 = vmatprep.subr.bf16.mxu1 %v826_v22 }
  0xaf   : > { %797 = vmatpush3.bf16.xpose.msra.mxu0 %v796_v14 }
  0xb0   : > { %799 = vmatprep.subr.bf16.mxu0 %v798_v18 }
  0xb3   : > { %829 = vmatpush1.bf16.xpose.msra.mxu1 %v828_v30 }
  0xb4   : > { %831 = vmatprep.subr.bf16.mxu1 %v830_v31 }
  0xb7   : > { %801 = vmatpush3.bf16.xpose.msra.mxu0 %v800_v25 }
  0xbb   : > { %833 = vmatpush1.bf16.xpose.msra.mxu1 %v832_v35 }
  0xbe   : > { %767 = vmatmul.mubr.f32.vlgmr.msra.gmra.mrb[0].mxu0 %v1351_v16 }
  0xbf   : > { %768 = vmatprep.mubr.f32.mxu0 %v338_v32 }
  0xc2   : > { %769 = vmatmul.mubr.f32.gmra.mrb[2].mxu0 %v338_v32 }
 0x191   : > { %v449_v43 = vpop.f32.mrb[0].mxu0 }
 0x192   : > { %v450_v44 = vadd.f32 %v449_v43, %v376_v41  ;;  %v451_v16 = vpop.f32.mrb[1].mxu0 }
 0x193   : > { %v452_v45 = vadd.f32 %v451_v16, %v380_v42 }
 0x194   : > { %v460_v48 = vmax.f32 %v450_v44, 0.0 }
 0x195   : > { %v455_v46 = vpop.f32.mrb[2].mxu0  ;;  %v461_v47 = vmax.f32 %v452_v45, 0.0 }
 0x196   : > { %v456_v49 = vadd.f32 %v455_v46, %v376_v41  ;;  %v457_v50 = vpop.f32.mrb[3].mxu0 }
 0x197   : > { %v458_v51 = vadd.f32 %v457_v50, %v380_v42  ;;  %562 = vmatprep.mubr.f32.mxu1 %v461_v47 }
 0x198   : > { %563 = vmatmul.mubr.f32.vlgmr.msra.gmra.mrb[0].mxu1 %v460_v48  ;;  %v462_v53 = vmax.f32 %v456_v49, 0.0 }
 0x199   : > { %v463_v52 = vmax.f32 %v458_v51, 0.0 }
 0x19b   : > { %567 = vmatprep.mubr.f32.mxu1 %v463_v52 }
 0x19c   : > { %568 = vmatmul.mubr.f32.gmra.mrb[2].mxu1 %v462_v53 }
 0x26b   : > { %v564_v55 = vpop.f32.mrb[0].mxu1 }
 0x26c   : > { %v573_v56 = vadd.f32 %v564_v55, %v464_v54  ;;  %v566_v57 = vpop.f32.mrb[1].mxu1  ;;  %580 = sbr.rel (%p726_p1) target bundleno = 637 (0x27d), region = 60 }
 0x26e   : > { %575 = vst [vmem:[#allocation2] sm:$0xff] %v573_v56 }
 0x26f   : > { %v569_v59 = vpop.f32.mrb[2].mxu1 }
 0x270   : > { %v574_v60 = vadd.f32 %v569_v59, %v465_v58  ;;  %v571_v61 = vpop.f32.mrb[3].mxu1 }
 0x272   : > { %576 = vst [vmem:[#allocation2 + $0x8] sm:$0xff] %v574_v60 }
 0x275   : > { %v581_v62 = vld [vmem:[#allocation2] sm:$0xff] }
 0x276   : > { %v590_v1 = vadd.f32 %v727_v63, %v581_v62 }
 0x278   : > { %592 = vst [vmem:[#allocation9] sm:$0xff] %v590_v1 }
 0x279   : > { %v582_v0 = vld [vmem:[#allocation2 + $0x8] sm:$0xff] }
 0x27a   : > { %v591_v2 = vadd.f32 %v727_v63, %v582_v0 }
 0x27c   : > { %593 = vst [vmem:[#allocation9 + $0x8] sm:$0xff] %v591_v2 }
 0x27d PF: > { %p860_p6 = scmp.eq.s32.totalorder %s1236_s17, 1  ;;  %s1103_s1 = smov [#allocation9]  }
 0x27e   : > { %s603_s15 = sshll.u32 %s1103_s1, 4  ;;  %s604_s15 = int_to_ptr.vmem [resolvable:$true] %s603_s15 }
 0x27f   : > { %s1008_s16 = scalar_lea.vmem %s604_s15, 256  ;;  %p1015_p12 = scmp.lt.s32.totalorder %s604_s15, %s604_s15 }
 0x280   : > { %p1009_p4 = scmp.ne.s32.totalorder %s604_s15, %s1008_s16  ;;  %p1016_p10 = scmp.lt.s32.totalorder %s1008_s16, %s1008_s16 }
 0x282   : > { %p1010_p7 = pnand %p1009_p4, %p860_p6  ;;  %p1017_p0 = por %p1016_p10, %p1015_p12 }
 0x284   : > { %p1011_p9 = pneg %p1010_p7 }
 0x286   : > { %p1018_p8 = pnand %p1017_p0, %p1011_p9 }
 0x288   : > { %1021 = shalt.err (!%p1018_p8)
}
 0x289   : > { %s1022_s14 = scalar_lea.hbm %s1464_s5, 256 }
 0x28a   : > { %p1023_p13 = scmp.ne.s32.totalorder %s1464_s5, %s1022_s14  ;;  %p1028_p5 = scmp.lt.u32.totalorder %s1022_s14, %s1464_s5 }
 0x28c   : > { %p1024_p2 = pnand %p1023_p13, %p860_p6 }
 0x28e   : > { %p1025_p3 = pneg %p1024_p2 }
 0x290   : > { %p1030_p11 = pnand %p1028_p5, %p1025_p3 }
 0x292   : > { %1033 = shalt.err (!%p1030_p11)
}
 0x293   : > { %s1104_s26 = smov 128   ;;  %s1105_s12 = smov 8  }
 0x294   : > { %843 = dma.vmem_to_hbm [thread:$0]  (%p860_p6), %s604_s15, 256, %s1464_s5, [#allocation5], %s1104_s26, %s1104_s26, %s1105_s12  }
 0x295   : > { %1067 = dma.done.wait (%p860_p6), [#allocation5], 256  }
 0x296   : > { %1069 = vsyncadd (%p860_p6), [#allocation5], 4294967040 }
 0x297 PF: > { %s20_s23 = sadd.s32 1, %s1092_s23   ;;  %s1483_s18 = smov %s1076_s19 }
 0x298   : > { %p17_p1 = scmp.ge.s32.totalorder %s20_s23, 4   ;;  %s1484_s19 = smov %s1080_s20 }
 0x299   : > { %s1485_s20 = smov %s1183_s30  ;;  %s1486_s21 = smov %s1088_s22 }
 0x29a   : > { %s1487_s22 = smov %s1489_s24  ;;  %19 = sbr.rel (!%p17_p1) target bundleno = 8 (0x8), region = 106 }
 0x2a1   :  { %619 = vsyncpa [#allocation4], 1 }
 0x2a2   :  { %621 = vsyncpa [#allocation4 + $0x1], 1 }
 0x2a3   :  { %622 = vsyncpa [#allocation7], 1 }
 0x2a4   :  { %624 = vsyncpa [#allocation7 + $0x1], 1 }
 0x2a5   :  { %625 = vsyncpa [#allocation5], 1 }
 0x2a6   :  { %627 = vsyncpa [#allocation5 + $0x1], 1 }

</bundles_post_ra>
